<compile_context>
chip_gen: v6e
topology: v6e:2x2x1
jax: 0.10.0
libtpu: 0.0.40
codegen_flags: <defaults>
</compile_context>

<pallas_src>
import jax
import jax.numpy as jnp
from jax.experimental import pallas as pl
from jax.experimental.pallas import tpu as pltpu


def _matmul_tanh_kernel(w_ref, x_ref, o_ref):
    # bf16 MXU matmul (weight pre-cast to bf16, activations cast in-register),
    # f32 accumulate, fused tanh epilogue (EUP slot -> essentially free).
    acc = jnp.dot(w_ref[...], x_ref[...].astype(w_ref.dtype),
                  preferred_element_type=jnp.float32)
    o_ref[...] = jnp.tanh(acc).astype(o_ref.dtype)


def _num_tensorcores():
    # v7x has 2 TensorCores per chip; v5e/v6e have 1. Used only to decide whether
    # splitting the M axis is worth it so dimension_semantics=("parallel", ...)
    # actually engages both cores.
    try:
        kind = jax.devices()[0].device_kind.lower()
        if "v7" in kind or "7x" in kind:
            return 2
    except Exception:
        pass
    return 1


def grouped_matmul_tanh(wT, x3d, *, tm=1024):
    """tanh(wT @ x3d[b]) for every batch entry b.

    wT:  (Cout, Cin) block-diagonal weight (bf16, static per model).
    x3d: (N, Cin, M) activations, M = H*W (lane-dense last dim), f32.
    Returns (N, Cout, M) float32.
    """
    Cout, Cin = wT.shape
    N, K, M = x3d.shape
    assert K == Cin, (K, Cin)

    # Keep the double-buffered working set far below v7x's 32 MiB scoped VMEM
    # (the tightest of the three generations); at these shapes it is ~0.2 MiB.
    tm = min(tm, 8192)
    tm = min(tm, M)

    # Engage both v7x TensorCores: ensure the parallel grid has >= num_cores
    # steps, but only with lane-dense (multiple-of-128) tiles. On v5e/v6e keep a
    # single step per sample — splitting a latency-bound kernel just adds the
    # ~0.35 us per-step overhead with nothing to hide.
    ncores = _num_tensorcores()
    if ncores > 1 and N * pl.cdiv(M, tm) < ncores:
        t = max(128, (M // ncores) // 128 * 128)
        if t < M and N * pl.cdiv(M, t) >= ncores:
            tm = t

    grid = (N, pl.cdiv(M, tm))

    cost = pl.CostEstimate(
        flops=2 * N * Cout * Cin * M,
        transcendentals=N * Cout * M,
        bytes_accessed=(wT.size * wT.dtype.itemsize
                        + x3d.size * x3d.dtype.itemsize
                        + N * Cout * M * 4),
    )

    return pl.pallas_call(
        _matmul_tanh_kernel,
        out_shape=jax.ShapeDtypeStruct((N, Cout, M), jnp.float32),
        grid_spec=pltpu.PrefetchScalarGridSpec(
            num_scalar_prefetch=0,
            grid=grid,
            in_specs=[
                pl.BlockSpec((Cout, Cin), lambda b, i: (0, 0)),        # weight resident
                pl.BlockSpec((None, Cin, tm), lambda b, i: (b, 0, i)),  # per-sample slab
            ],
            out_specs=pl.BlockSpec((None, Cout, tm), lambda b, i: (b, 0, i)),
        ),
        compiler_params=pltpu.CompilerParams(
            # batch and M tiles are independent -> both "parallel" (shards across
            # v7x's 2 TCs; a no-op on single-TC v5e/v6e).
            dimension_semantics=("parallel", "parallel"),
        ),
        cost_estimate=cost,
    )(wT, x3d)


def build_block_diag_weight(w_grouped, groups, dtype=jnp.bfloat16):
    """Build the (Cout, Cin) block-diagonal weight, pre-transposed for W^T @ X.

    w_grouped: (Cin, Cout//groups, 1, 1) -- PyTorch ConvTranspose2d weight layout.
    Static per model: call once, outside the per-step forward. Cast once to bf16
    for the bf16-native MXU (small numeric deviation vs f32 PyTorch).
    """
    Cin, cout_g = w_grouped.shape[0], w_grouped.shape[1]
    cin_g = Cin // groups
    w3 = w_grouped[:, :, 0, 0].reshape(groups, cin_g, cout_g)
    # per-group blocks transposed to (cout_g, cin_g): y[o] = sum_c w[c, o_local] * x[c]
    blocks = jnp.transpose(w3, (0, 2, 1))
    wT = jax.scipy.linalg.block_diag(*blocks)  # (Cout, Cin)
    return wT.astype(dtype)


@jax.jit
def model_forward(x_nchw, wT):
    """tanh(ConvTranspose2d(C, C, groups=g, kernel_size=1, stride=2, bias=False)(x))."""
    N, Cin, H, W = x_nchw.shape
    Cout = wT.shape[0]

    # (N, Cin, H, W) -> (N, Cin, H*W): pure reshape (no transpose) for any N;
    # the batch stays a grid axis inside the kernel (no moveaxis copy).
    x3d = x_nchw.reshape(N, Cin, H * W)

    # Hot path: fused block-diagonal matmul + tanh in Pallas.
    y = grouped_matmul_tanh(wT, x3d)       # (N, Cout, H*W), f32
    y = y.reshape(N, Cout, H, W)

    # Stride-2 zero insertion of ConvTranspose2d(k=1, s=2) as one interior pad:
    # out[:, :, 2h, 2w] = y, other positions 0 (correct post-tanh since bias=False
    # and tanh(0) = 0). Kept outside the kernel so kernel stores stay fully
    # lane-dense; an in-kernel strided scatter to (31, 31) would force vst.msk.
    return jax.lax.pad(
        y, jnp.zeros((), y.dtype),
        ((0, 0, 0), (0, 0, 0), (0, 0, 1), (0, 0, 1)),
    )


if __name__ == "__main__":
    # channels adjusted 128 -> 120 so that groups=6 divides evenly (see TODO above)
    N, C, H, W = 1, 120, 16, 16
    GROUPS = 6

    key = jax.random.PRNGKey(0)
    kx, kw = jax.random.split(key)

    x1 = jax.random.normal(kx, (N, C, H, W), dtype=jnp.float32)

    # PyTorch ConvTranspose2d weight layout: (in_channels, out_channels//groups, kH, kW)
    fan_in = (C // GROUPS) * 1 * 1
    bound = 1.0 / (fan_in ** 0.5)
    w_grouped = jax.random.uniform(
        kw, (C, C // GROUPS, 1, 1), dtype=jnp.float32, minval=-bound, maxval=bound
    )

    # Weight assembly is static per model: build (and cast to bf16) once.
    wT = jax.block_until_ready(build_block_diag_weight(w_grouped, GROUPS))

    out = model_forward(x1, wT)
    jax.block_until_ready(out)

    assert out.shape == (N, C, 2 * H - 1, 2 * W - 1), out.shape
    print("KERNEL_OK")
</pallas_src>

<mosaic_0001>
module attributes {stable_mosaic.version = 11 : i64} {
  func.func @_matmul_tanh_kernel(%arg0: i32, %arg1: i32, %arg2: memref<120x120xbf16, #tpu.memory_space<vmem>>, %arg3: memref<1x120x256xf32, #tpu.memory_space<vmem>>, %arg4: memref<1x120x256xf32, #tpu.memory_space<vmem>>) attributes {dimension_semantics = [#tpu.dimension_semantics<parallel>, #tpu.dimension_semantics<parallel>], iteration_bounds = array<i64: 1, 1>, scalar_prefetch = 0 : i64, scratch_operands = 0 : i64, tpu.core_type = #tpu.core_type<tc>, window_params = [{pipeline_mode = #tpu.pipeline_mode<synchronous>, transform_indices = @transform_0, window_bounds = array<i64: 120, 120>}, {transform_indices = @transform_1, window_bounds = array<i64: 1, 120, 256>}, {transform_indices = @transform_2, window_bounds = array<i64: 1, 120, 256>}]} {
    %c0 = arith.constant 0 : index
    %c0_0 = arith.constant 0 : index
    %0 = vector.load %arg2[%c0, %c0_0] : memref<120x120xbf16, #tpu.memory_space<vmem>>, vector<120x120xbf16>
    %c0_1 = arith.constant 0 : index
    %c0_2 = arith.constant 0 : index
    %c0_3 = arith.constant 0 : index
    %1 = vector.load %arg3[%c0_1, %c0_2, %c0_3] : memref<1x120x256xf32, #tpu.memory_space<vmem>>, vector<1x120x256xf32>
    %2 = vector.shape_cast %1 : vector<1x120x256xf32> to vector<120x256xf32>
    %3 = arith.truncf %2 : vector<120x256xf32> to vector<120x256xbf16>
    %cst = arith.constant dense<0.000000e+00> : vector<120x256xf32>
    %4 = tpu.matmul %0, %3, %cst {dimension_numbers = #tpu.dot_dimension_numbers<[1], [0], [0], [1], [0, 0, 1, 1], [], []>} : vector<120x120xbf16>, vector<120x256xbf16>, vector<120x256xf32> -> vector<120x256xf32>
    %5 = math.tanh %4 : vector<120x256xf32>
    %c0_4 = arith.constant 0 : index
    %c0_5 = arith.constant 0 : index
    %c0_6 = arith.constant 0 : index
    %6 = vector.load %arg4[%c0_4, %c0_5, %c0_6] : memref<1x120x256xf32, #tpu.memory_space<vmem>>, vector<1x120x256xf32>
    %7 = vector.shape_cast %6 : vector<1x120x256xf32> to vector<120x256xf32>
    %8 = vector.shape_cast %5 : vector<120x256xf32> to vector<1x120x256xf32>
    tpu.vector_store %arg4[%c0_4, %c0_5, %c0_6], %8 {strides = array<i32>} : memref<1x120x256xf32, #tpu.memory_space<vmem>>, vector<1x120x256xf32>,
    return
  }
  func.func @transform_0(%arg0: i32, %arg1: i32) -> (i32, i32) {
    %c0_i32 = arith.constant 0 : i32
    %c0_i32_0 = arith.constant 0 : i32
    %c0_i32_1 = arith.constant 0 : i32
    return %c0_i32, %c0_i32_0 : i32, i32
  }
  func.func @transform_1(%arg0: i32, %arg1: i32) -> (i32, i32, i32) {
    %c0_i32 = arith.constant 0 : i32
    %c0_i32_0 = arith.constant 0 : i32
    return %arg0, %c0_i32, %arg1 : i32, i32, i32
  }
  func.func @transform_2(%arg0: i32, %arg1: i32) -> (i32, i32, i32) {
    %c0_i32 = arith.constant 0 : i32
    %c0_i32_0 = arith.constant 0 : i32
    return %arg0, %c0_i32, %arg1 : i32, i32, i32
  }
}

</mosaic_0001>

<bundles_post_ra>
// kernel: model_forward.1
= control target key start
LH: loop header
LB: loop body
LE: loop exit
PB: predicated region body
PF: predicated region fallthrough
CT: control target
= control target key end

     0   :  { %vm136_vm0 = vcmask 1043456   ;;  %v420_v3 = vmov 0   ;;  %vm111_vm1 = vcmask 982016   ;;  %s659_s1 = inlined_call_operand.vmem [shape: f32[1,120,256], index: 1, kind: input, shape index: {}]   ;;  %s660_s0 = inlined_call_operand.vmem [shape: bf16[120,120], index: 0, kind: input, shape index: {}]   ;;  %s661_s2 = inlined_call_operand.vmem [shape: f32[1,120,256], index: 2, kind: output, shape index: {}]  }
   0x1   :  { %v56_v0 = vld [vmem:[%s659_s1 + $0xe8] sm:$0xff]  ;;  %v55_v1 = vld [vmem:[%s659_s1 + $0xe0] sm:$0xff]  ;;  %175 = vmatprep.mubr.bf16.mxu0 %v420_v3  ;;  %215 = vmatprep.mubr.bf16.mxu1 %v420_v3  ;;  %v54_v6 = vld [vmem:[%s659_s1 + $0xd8] sm:$0xff] }
   0x2   :  { %v52_v2 = vld [vmem:[%s659_s1 + $0xc8] sm:$0xff]  ;;  %v72_v4 = vpack.c.bf16 %v56_v0, %v56_v0  ;;  %v71_v5 = vpack.c.bf16 %v55_v1, %v55_v1  ;;  %v51_v7 = vld [vmem:[%s659_s1 + $0xc0] sm:$0xff]  ;;  %v53_v8 = vld [vmem:[%s659_s1 + $0xd0] sm:$0xff] }
   0x3   :  { %v70_v9 = vpack.c.bf16 %v54_v6, %v52_v2  ;;  %v48_v10 = vld [vmem:[%s659_s1 + $0xa8] sm:$0xff]  ;;  %v50_v11 = vld [vmem:[%s659_s1 + $0xb8] sm:$0xff]  ;;  %v69_v13 = vpack.c.bf16 %v53_v8, %v51_v7  ;;  %v47_v15 = vld [vmem:[%s659_s1 + $0xa0] sm:$0xff] }
   0x4   :  { %326 = vmatprep.subr.msk.bf16.mxu0 %vm136_vm0, %v72_v4  ;;  %335 = vmatprep.subr.msk.bf16.mxu1 %vm136_vm0, %v72_v4  ;;  %v138_v12 = vsel %vm136_vm0, %v71_v5, 0  ;;  %v68_v14 = vpack.c.bf16 %v50_v11, %v48_v10  ;;  %v49_v16 = vld [vmem:[%s659_s1 + $0xb0] sm:$0xff]  ;;  %v44_v17 = vld [vmem:[%s659_s1 + $0x88] sm:$0xff]  ;;  %v46_v18 = vld [vmem:[%s659_s1 + $0x98] sm:$0xff] }
   0x5   :  { %144 = vmatpush1.bf16.msra.mxu0 %v138_v12  ;;  %343 = vmatpush1.bf16.msra.mxu1 %v138_v12  ;;  %v67_v19 = vpack.c.bf16 %v49_v16, %v47_v15  ;;  %v66_v20 = vpack.c.bf16 %v46_v18, %v44_v17  ;;  %v43_v21 = vld [vmem:[%s659_s1 + $0x80] sm:$0xff]  ;;  %v45_v22 = vld [vmem:[%s659_s1 + $0x90] sm:$0xff]  ;;  %v40_v23 = vld [vmem:[%s659_s1 + $0x68] sm:$0xff] }
   0x6   :  { %145 = vmatprep.subr.bf16.mxu0 %v70_v9  ;;  %336 = vmatprep.subr.bf16.mxu1 %v70_v9  ;;  %v42_v24 = vld [vmem:[%s659_s1 + $0x78] sm:$0xff]  ;;  %v39_v25 = vld [vmem:[%s659_s1 + $0x60] sm:$0xff]  ;;  %v65_v26 = vpack.c.bf16 %v45_v22, %v43_v21  ;;  %v41_v27 = vld [vmem:[%s659_s1 + $0x70] sm:$0xff] }
   0x7   :  { %v64_v28 = vpack.c.bf16 %v42_v24, %v40_v23  ;;  %v36_v29 = vld [vmem:[%s659_s1 + $0x48] sm:$0xff]  ;;  %v38_v30 = vld [vmem:[%s659_s1 + $0x58] sm:$0xff]  ;;  %v63_v31 = vpack.c.bf16 %v41_v27, %v39_v25  ;;  %v35_v33 = vld [vmem:[%s659_s1 + $0x40] sm:$0xff] }
   0x8   :  { %v62_v32 = vpack.c.bf16 %v38_v30, %v36_v29  ;;  %v37_v34 = vld [vmem:[%s659_s1 + $0x50] sm:$0xff]  ;;  %v32_v35 = vld [vmem:[%s659_s1 + $0x28] sm:$0xff]  ;;  %v34_v36 = vld [vmem:[%s659_s1 + $0x38] sm:$0xff] }
   0x9   :  { %146 = vmatpush1.bf16.msra.mxu0 %v69_v13  ;;  %344 = vmatpush1.bf16.msra.mxu1 %v69_v13  ;;  %v61_v37 = vpack.c.bf16 %v37_v34, %v35_v33  ;;  %v60_v38 = vpack.c.bf16 %v34_v36, %v32_v35  ;;  %v31_v39 = vld [vmem:[%s659_s1 + $0x20] sm:$0xff]  ;;  %v33_v40 = vld [vmem:[%s659_s1 + $0x30] sm:$0xff]  ;;  %v28_v41 = vld [vmem:[%s659_s1 + $0x8] sm:$0xff] }
   0xa   :  { %147 = vmatprep.subr.bf16.mxu0 %v68_v14  ;;  %337 = vmatprep.subr.bf16.mxu1 %v68_v14  ;;  %v30_v42 = vld [vmem:[%s659_s1 + $0x18] sm:$0xff]  ;;  %v59_v43 = vpack.c.bf16 %v33_v40, %v31_v39  ;;  %v27_v45 = vld [vmem:[%s659_s1] sm:$0xff]  ;;  %v29_v46 = vld [vmem:[%s659_s1 + $0x10] sm:$0xff] }
   0xb   :  { %v58_v44 = vpack.c.bf16 %v30_v42, %v28_v41  ;;  %v57_v47 = vpack.c.bf16 %v29_v46, %v27_v45  ;;  %v352_v48 = vld [vmem:[%s660_s0] sm:$0xff]   ;;  %v354_v50 = vld [vmem:[%s660_s0 + $0x8] sm:$0xff]   ;;  %v356_v52 = vld [vmem:[%s660_s0 + $0x10] sm:$0xff]  }
   0xc   :  { %v353_v49 = vld [vmem:[%s660_s0 + $0x20] sm:$0xff]   ;;  %v355_v51 = vld [vmem:[%s660_s0 + $0x28] sm:$0xff]   ;;  %v357_v53 = vld [vmem:[%s660_s0 + $0x30] sm:$0xff]  }
   0xd   :  { %148 = vmatpush1.bf16.msra.mxu0 %v67_v19  ;;  %345 = vmatpush1.bf16.msra.mxu1 %v67_v19  ;;  %v358_v54 = vld [vmem:[%s660_s0 + $0x18] sm:$0xff]  }
   0xe   :  { %149 = vmatprep.subr.bf16.mxu0 %v66_v20  ;;  %338 = vmatprep.subr.bf16.mxu1 %v66_v20  ;;  %v359_v55 = vld [vmem:[%s660_s0 + $0x38] ss:$0 sps:$4 sm:$0xff]  }
  0x11   :  { %150 = vmatpush1.bf16.msra.mxu0 %v65_v26  ;;  %346 = vmatpush1.bf16.msra.mxu1 %v65_v26 }
  0x12   :  { %151 = vmatprep.subr.bf16.mxu0 %v64_v28  ;;  %339 = vmatprep.subr.bf16.mxu1 %v64_v28 }
  0x15   :  { %152 = vmatpush1.bf16.msra.mxu0 %v63_v31  ;;  %347 = vmatpush1.bf16.msra.mxu1 %v63_v31 }
  0x16   :  { %153 = vmatprep.subr.bf16.mxu0 %v62_v32  ;;  %340 = vmatprep.subr.bf16.mxu1 %v62_v32 }
  0x19   :  { %154 = vmatpush1.bf16.msra.mxu0 %v61_v37  ;;  %348 = vmatpush1.bf16.msra.mxu1 %v61_v37 }
  0x1a   :  { %155 = vmatprep.subr.bf16.mxu0 %v60_v38  ;;  %341 = vmatprep.subr.bf16.mxu1 %v60_v38 }
  0x1d   :  { %156 = vmatpush1.bf16.msra.mxu0 %v59_v43  ;;  %349 = vmatpush1.bf16.msra.mxu1 %v59_v43 }
  0x1e   :  { %157 = vmatprep.subr.bf16.mxu0 %v58_v44  ;;  %342 = vmatprep.subr.bf16.mxu1 %v58_v44 }
  0x21   :  { %158 = vmatpush1.bf16.msra.mxu0 %v57_v47  ;;  %350 = vmatpush1.bf16.msra.mxu1 %v57_v47 }
  0x24   :  { %327 = vmatmul.mubr.msk.bf16.vlgmr.msra.gmra.mxu0 %vm111_vm1, %v352_v48  ;;  %331 = vmatmul.mubr.msk.bf16.vlgmr.msra.gmra.mxu1 %vm111_vm1, %v353_v49 }
  0x25   :  { %185 = vmatprep.mubr.bf16.mxu0 %v420_v3  ;;  %225 = vmatprep.mubr.bf16.mxu1 %v420_v3 }
  0x2c   :  { %328 = vmatmul.mubr.msk.bf16.gmra.mxu0 %vm111_vm1, %v354_v50  ;;  %332 = vmatmul.mubr.msk.bf16.gmra.mxu1 %vm111_vm1, %v355_v51 }
  0x2d   :  { %195 = vmatprep.mubr.bf16.mxu0 %v420_v3  ;;  %235 = vmatprep.mubr.bf16.mxu1 %v420_v3 }
  0x34   :  { %329 = vmatmul.mubr.msk.bf16.gmra.mxu0 %vm111_vm1, %v356_v52  ;;  %333 = vmatmul.mubr.msk.bf16.gmra.mxu1 %vm111_vm1, %v357_v53 }
  0x35   :  { %205 = vmatprep.mubr.bf16.mxu0 %v420_v3  ;;  %245 = vmatprep.mubr.bf16.mxu1 %v420_v3 }
  0x3c   :  { %330 = vmatmul.mubr.msk.bf16.gmra.mxu0 %vm111_vm1, %v358_v54  ;;  %334 = vmatmul.mubr.msk.bf16.gmra.mxu1 %vm111_vm1, %v359_v55 }
  0xe4   :  { %v177_v56 = vpop.f32.mrf.mxu0  ;;  %v217_v57 = vpop.f32.mrf.mxu1 }
  0xe5   :  { %360 = vtanh.f32 %v177_v56 }
  0xe6   :  { %362 = vtanh.f32 %v217_v57  ;;  %v179_v58 = vpop.f32.mrf.mxu0  ;;  %v219_v59 = vpop.f32.mrf.mxu1 }
  0xe7   :  { %364 = vtanh.f32 %v179_v58 }
  0xe8   :  { %366 = vtanh.f32 %v219_v59  ;;  %v181_v60 = vpop.f32.mrf.mxu0  ;;  %v221_v61 = vpop.f32.mrf.mxu1 }
  0xe9   :  { %368 = vtanh.f32 %v181_v60 }
  0xea   :  { %370 = vtanh.f32 %v221_v61  ;;  %v183_v62 = vpop.f32.mrf.mxu0  ;;  %v223_v63 = vpop.f32.mrf.mxu1 }
  0xeb   :  { %372 = vtanh.f32 %v183_v62 }
  0xec   :  { %374 = vtanh.f32 %v223_v63  ;;  %v187_v0 = vpop.f32.mrf.mxu0  ;;  %v227_v1 = vpop.f32.mrf.mxu1 }
  0xed   :  { %376 = vtanh.f32 %v187_v0 }
  0xee   :  { %378 = vtanh.f32 %v227_v1  ;;  %v189_v2 = vpop.f32.mrf.mxu0  ;;  %v229_v3 = vpop.f32.mrf.mxu1 }
  0xef   :  { %380 = vtanh.f32 %v189_v2 }
  0xf0   :  { %382 = vtanh.f32 %v229_v3  ;;  %v191_v4 = vpop.f32.mrf.mxu0  ;;  %v231_v5 = vpop.f32.mrf.mxu1 }
  0xf1   :  { %384 = vtanh.f32 %v191_v4 }
  0xf2   :  { %v361_v6 = vpop.eup %360  ;;  %386 = vtanh.f32 %v231_v5  ;;  %v193_v7 = vpop.f32.mrf.mxu0 }
  0xf3   :  { %v233_v8 = vpop.f32.mrf.mxu1  ;;  %v363_v9 = vpop.eup %362  ;;  %284 = vst [vmem:[%s661_s2] sm:$0xff] %v361_v6  ;;  %388 = vtanh.f32 %v193_v7 }
  0xf4   :  { %v365_v10 = vpop.eup %364  ;;  %300 = vst [vmem:[%s661_s2 + $0x80] sm:$0xff] %v363_v9  ;;  %390 = vtanh.f32 %v233_v8  ;;  %v197_v11 = vpop.f32.mrf.mxu0 }
  0xf5   :  { %v237_v12 = vpop.f32.mrf.mxu1  ;;  %v367_v13 = vpop.eup %366  ;;  %285 = vst [vmem:[%s661_s2 + $0x8] sm:$0xff] %v365_v10  ;;  %392 = vtanh.f32 %v197_v11 }
  0xf6   :  { %v369_v14 = vpop.eup %368  ;;  %301 = vst [vmem:[%s661_s2 + $0x88] sm:$0xff] %v367_v13  ;;  %394 = vtanh.f32 %v237_v12  ;;  %v199_v15 = vpop.f32.mrf.mxu0 }
  0xf7   :  { %v239_v16 = vpop.f32.mrf.mxu1  ;;  %v371_v17 = vpop.eup %370  ;;  %286 = vst [vmem:[%s661_s2 + $0x10] sm:$0xff] %v369_v14  ;;  %396 = vtanh.f32 %v199_v15 }
  0xf8   :  { %v373_v18 = vpop.eup %372  ;;  %302 = vst [vmem:[%s661_s2 + $0x90] sm:$0xff] %v371_v17  ;;  %398 = vtanh.f32 %v239_v16  ;;  %v201_v19 = vpop.f32.mrf.mxu0 }
  0xf9   :  { %v241_v20 = vpop.f32.mrf.mxu1  ;;  %v375_v21 = vpop.eup %374  ;;  %287 = vst [vmem:[%s661_s2 + $0x18] sm:$0xff] %v373_v18  ;;  %400 = vtanh.f32 %v201_v19 }
  0xfa   :  { %v377_v22 = vpop.eup %376  ;;  %303 = vst [vmem:[%s661_s2 + $0x98] sm:$0xff] %v375_v21  ;;  %402 = vtanh.f32 %v241_v20  ;;  %v203_v23 = vpop.f32.mrf.mxu0 }
  0xfb   :  { %v243_v24 = vpop.f32.mrf.mxu1  ;;  %v379_v25 = vpop.eup %378  ;;  %288 = vst [vmem:[%s661_s2 + $0x20] sm:$0xff] %v377_v22  ;;  %404 = vtanh.f32 %v203_v23 }
  0xfc   :  { %v381_v26 = vpop.eup %380  ;;  %304 = vst [vmem:[%s661_s2 + $0xa0] sm:$0xff] %v379_v25  ;;  %406 = vtanh.f32 %v243_v24  ;;  %v207_v27 = vpop.f32.mrf.mxu0 }
  0xfd   :  { %v247_v28 = vpop.f32.mrf.mxu1  ;;  %v383_v29 = vpop.eup %382  ;;  %289 = vst [vmem:[%s661_s2 + $0x28] sm:$0xff] %v381_v26  ;;  %408 = vtanh.f32 %v207_v27 }
  0xfe   :  { %v385_v30 = vpop.eup %384  ;;  %305 = vst [vmem:[%s661_s2 + $0xa8] sm:$0xff] %v383_v29  ;;  %410 = vtanh.f32 %v247_v28  ;;  %v209_v31 = vpop.f32.mrf.mxu0 }
  0xff   :  { %v249_v32 = vpop.f32.mrf.mxu1  ;;  %v387_v33 = vpop.eup %386  ;;  %290 = vst [vmem:[%s661_s2 + $0x30] sm:$0xff] %v385_v30  ;;  %412 = vtanh.f32 %v209_v31 }
 0x100   :  { %v389_v34 = vpop.eup %388  ;;  %306 = vst [vmem:[%s661_s2 + $0xb0] sm:$0xff] %v387_v33  ;;  %414 = vtanh.f32 %v249_v32  ;;  %v211_v35 = vpop.f32.mrf.mxu0 }
 0x101   :  { %v251_v36 = vpop.f32.mrf.mxu1  ;;  %v391_v37 = vpop.eup %390  ;;  %291 = vst [vmem:[%s661_s2 + $0x38] sm:$0xff] %v389_v34  ;;  %416 = vtanh.f32 %v211_v35 }
 0x102   :  { %v393_v38 = vpop.eup %392  ;;  %307 = vst [vmem:[%s661_s2 + $0xb8] sm:$0xff] %v391_v37  ;;  %v213_v39 = vpop.f32.mrf.mxu0 }
 0x103   :  { %v252_v40 = vpop.f32.mrf.mxu1  ;;  %v395_v41 = vpop.eup %394  ;;  %292 = vst [vmem:[%s661_s2 + $0x40] sm:$0xff] %v393_v38  ;;  %418 = vtanh.f32 %v213_v39 }
 0x104   :  { %v397_v42 = vpop.eup %396  ;;  %308 = vst [vmem:[%s661_s2 + $0xc0] sm:$0xff] %v395_v41 }
 0x105   :  { %v399_v43 = vpop.eup %398  ;;  %293 = vst [vmem:[%s661_s2 + $0x48] sm:$0xff] %v397_v42 }
 0x106   :  { %v401_v44 = vpop.eup %400  ;;  %309 = vst [vmem:[%s661_s2 + $0xc8] sm:$0xff] %v399_v43 }
 0x107   :  { %v403_v45 = vpop.eup %402  ;;  %294 = vst [vmem:[%s661_s2 + $0x50] sm:$0xff] %v401_v44 }
 0x108   :  { %v405_v46 = vpop.eup %404  ;;  %310 = vst [vmem:[%s661_s2 + $0xd0] sm:$0xff] %v403_v45 }
 0x109   :  { %v407_v47 = vpop.eup %406  ;;  %295 = vst [vmem:[%s661_s2 + $0x58] sm:$0xff] %v405_v46 }
 0x10a   :  { %v409_v48 = vpop.eup %408  ;;  %311 = vst [vmem:[%s661_s2 + $0xd8] sm:$0xff] %v407_v47 }
 0x10b   :  { %v411_v49 = vpop.eup %410  ;;  %296 = vst [vmem:[%s661_s2 + $0x60] sm:$0xff] %v409_v48 }
 0x10c   :  { %v413_v50 = vpop.eup %412  ;;  %312 = vst [vmem:[%s661_s2 + $0xe0] sm:$0xff] %v411_v49 }
 0x10d   :  { %v415_v51 = vpop.eup %414  ;;  %297 = vst [vmem:[%s661_s2 + $0x68] sm:$0xff] %v413_v50 }
 0x10e   :  { %v417_v52 = vpop.eup %416  ;;  %313 = vst [vmem:[%s661_s2 + $0xe8] sm:$0xff] %v415_v51 }
 0x10f   :  { %298 = vst [vmem:[%s661_s2 + $0x70] sm:$0xff] %v417_v52 }
 0x110   :  { %v419_v53 = vpop.eup %418 }
 0x111   :  { %299 = vst [vmem:[%s661_s2 + $0x78] sm:$0xff] %v419_v53 }

</bundles_post_ra>
